<compile_context>
chip_gen: v7x
topology: tpu7x:2x2x1
jax: 0.10.0
libtpu: 0.0.40
codegen_flags: <defaults>
</compile_context>

<pallas_src>
import numpy as np

import jax
import jax.numpy as jnp
from jax.experimental import pallas as pl
from jax.experimental.pallas import tpu as pltpu


# ----------------------------------------------------------------------------
# Helpers.
# ----------------------------------------------------------------------------

def _round_up(x, m):
    return ((x + m - 1) // m) * m


def _pad2(a, rows, cols):
    return jnp.pad(a, ((0, rows - a.shape[0]), (0, cols - a.shape[1])))


# ----------------------------------------------------------------------------
# Fused head kernel:  pred = P @ Ahat @ (X @ W) + b
#
# Grid: one step per scheduled nonzero Ahat block, ordered column-block-major
# (all row blocks m of a column block n are consecutive).  Scalar-prefetched
# schedule arrays (SMEM):
#   m_of[s], n_of[s]  : block indices of the Ahat tile for step s
#   first[s], last[s] : 1 iff step s is the first / last step of its n block
#
# VMEM state:
#   o_ref   [Gp, Doutp] f32 : resident output accumulator (seeded with bias)
#   pa_ref  [Gp, T]     f32 : PA[:, n-block] accumulator
#   xw_ref  [T, Doutp]  f32 : (X @ W)[n-block, :]  (computed once per n block)
# ----------------------------------------------------------------------------

def _fused_head_kernel(m_of_ref, n_of_ref, first_ref, last_ref,       # SMEM
                       pool_ref, ahat_ref, x_ref, w_ref, bias_ref,    # VMEM in
                       o_ref,                                         # VMEM out
                       pa_ref, xw_ref):                               # scratch
    s = pl.program_id(0)

    # Very first scheduled step: seed the resident output block with the bias
    # (valid because every mean-pool row sums to 1; see caveat above).
    @pl.when(s == 0)
    def _():
        o_ref[...] = jnp.zeros_like(o_ref) + bias_ref[...]

    # First step of this Ahat column block: reset the PA accumulator and
    # compute the XW rows for these node columns (each column block is
    # scheduled exactly once, so X@W is computed exactly once overall).
    @pl.when(first_ref[s] == 1)
    def _():
        pa_ref[...] = jnp.zeros_like(pa_ref)
        xw_ref[...] = jnp.dot(x_ref[...], w_ref[...],
                              preferred_element_type=jnp.float32)

    # PA[:, n-block] += pool[:, m-block] @ Ahat[m-block, n-block]
    # (bf16 MXU inputs, f32 accumulation).
    pa_ref[...] += jnp.dot(pool_ref[...], ahat_ref[...],
                           preferred_element_type=jnp.float32)

    # Last step of this column block: fold the finished PA column block into
    # the resident prediction.  Done in f32 so PA is never rounded to bf16
    # (tiny: Gp rows).
    @pl.when(last_ref[s] == 1)
    def _():
        o_ref[...] += jnp.dot(pa_ref[...], xw_ref[...],
                              preferred_element_type=jnp.float32)


def same_gnn_head(x_p, w_p, bias_p, ahat_p, pool_p, schedule,
                  num_graphs, dout, *, tile,
                  vmem_limit_bytes=48 * 1024 * 1024):
    """Fused SAMEGNNHead forward on pre-padded, pre-cast operands.

    x_p    [Np, Dinp]  bf16   (padded node features)
    w_p    [Dinp,Doutp] bf16  (padded GNN-layer weight)
    bias_p [1, Doutp]  f32
    ahat_p [Np, Np]    bf16   (padded normalized adjacency)
    pool_p [Gp, Np]    bf16   (padded mean-pool matrix)
    schedule: (m_of, n_of, first, last) int32[S] nonzero-block schedule.

    Returns pred [num_graphs, dout] f32.
    """
    m_of, n_of, first, last = schedule
    S = int(m_of.shape[0])
    Gp, Np = pool_p.shape
    Dinp = x_p.shape[1]
    Doutp = w_p.shape[1]
    T = tile
    assert Np % T == 0 and ahat_p.shape == (Np, Np)

    pred_p = pl.pallas_call(
        _fused_head_kernel,
        out_shape=jax.ShapeDtypeStruct((Gp, Doutp), jnp.float32),
        grid_spec=pltpu.PrefetchScalarGridSpec(
            num_scalar_prefetch=4,
            grid=(S,),
            in_specs=[
                # pool columns for row block m (re-DMA'd only when m changes)
                pl.BlockSpec((Gp, T), lambda s, mo, no, fi, la: (0, mo[s])),
                # the scheduled (m, n) Ahat tile -- only nonzero tiles stream
                pl.BlockSpec((T, T), lambda s, mo, no, fi, la: (mo[s], no[s])),
                # X rows for column block n (DMA'd once per n block)
                pl.BlockSpec((T, Dinp), lambda s, mo, no, fi, la: (no[s], 0)),
                # W and bias: VMEM-resident for the whole grid
                pl.BlockSpec((Dinp, Doutp), lambda s, mo, no, fi, la: (0, 0)),
                pl.BlockSpec((1, Doutp), lambda s, mo, no, fi, la: (0, 0)),
            ],
            out_specs=pl.BlockSpec((Gp, Doutp),
                                   lambda s, mo, no, fi, la: (0, 0)),
            scratch_shapes=[
                pltpu.VMEM((Gp, T), jnp.float32),      # PA accumulator
                pltpu.VMEM((T, Doutp), jnp.float32),   # XW block
            ],
        ),
        compiler_params=pltpu.CompilerParams(
            # Single sequential schedule axis (output block constant across it).
            dimension_semantics=("arbitrary",),
            vmem_limit_bytes=vmem_limit_bytes),
    )(m_of, n_of, first, last, pool_p, ahat_p, x_p, w_p, bias_p)

    # Tiny [Gp, Doutp] -> [G, dout] slice (negligible; everything upstream
    # stays padded so nothing is re-padded between calls).
    return pred_p[:num_graphs, :dout]


# ----------------------------------------------------------------------------
# Plain-JAX / host glue (graph preprocessing, not part of the hot kernel path).
# Builders emit operands ALREADY padded to the tile grid and already bf16.
# ----------------------------------------------------------------------------

def build_normalized_adj(edge_index, num_nodes, padded_nodes):
    """Padded bf16 dense D^-1/2 (A + I) D^-1/2 from a [2, E] edge_index."""
    src, dst = edge_index[0], edge_index[1]
    a = jnp.zeros((padded_nodes, padded_nodes), jnp.float32)
    a = a.at[src, dst].set(1.0)
    a = a.at[dst, src].set(1.0)                         # treat as undirected
    diag = jnp.arange(num_nodes)
    a = a.at[diag, diag].set(1.0)                       # self loops (idempotent)
    deg = a.sum(axis=1)
    dinv = jnp.where(deg > 0, 1.0 / jnp.sqrt(jnp.maximum(deg, 1e-12)), 0.0)
    ahat = a * dinv[:, None] * dinv[None, :]            # padded rows/cols = 0
    return ahat.astype(jnp.bfloat16)


def build_mean_pool(batch_vec, num_graphs, padded_graphs, padded_nodes):
    """Padded bf16 [Gp, Np] mean-pooling matrix from node->graph assignment."""
    node_graph = jnp.full((padded_nodes,), -1, jnp.int32)
    node_graph = node_graph.at[:batch_vec.shape[0]].set(batch_vec)
    onehot = (node_graph[None, :]
              == jnp.arange(padded_graphs)[:, None]).astype(jnp.float32)
    counts = jnp.maximum(onehot.sum(axis=1, keepdims=True), 1.0)
    return (onehot / counts).astype(jnp.bfloat16)


def build_block_schedule(ahat_p, tile):
    """Column-block-major schedule of nonzero Ahat tiles.

    Returns int32 arrays (m_of, n_of, first_of_n, last_of_n), each [S].
    For block-diagonal batched graphs this skips every all-zero tile.
    """
    Np = ahat_p.shape[0]
    nb = Np // tile
    blk = jnp.abs(ahat_p.astype(jnp.float32)).reshape(nb, tile, nb, tile)
    nnz = np.asarray(jax.device_get(blk.sum(axis=(1, 3)) > 0))  # [nb, nb]

    m_of, n_of, first, last = [], [], [], []
    for n in range(nb):
        rows = np.nonzero(nnz[:, n])[0]
        for i, m in enumerate(rows):
            m_of.append(int(m))
            n_of.append(int(n))
            first.append(1 if i == 0 else 0)
            last.append(1 if i == len(rows) - 1 else 0)
    assert m_of, "adjacency has no nonzero blocks"
    as_i32 = lambda v: jnp.asarray(np.asarray(v, dtype=np.int32))
    return as_i32(m_of), as_i32(n_of), as_i32(first), as_i32(last)


# ----------------------------------------------------------------------------
# Demo / self-check.
# ----------------------------------------------------------------------------

if __name__ == "__main__":
    key = jax.random.PRNGKey(0)
    k_x, k_w, k_b, k_y = jax.random.split(key, 4)

    N, Din, Dout, G = 16, 32, 32, 2       # nodes, in-dim, out-dim, graphs
    TILE_PREF = 512                       # Ahat tile (clamps to 128 here)

    # Node features.
    x = jax.random.normal(k_x, (N, Din), dtype=jnp.float32)

    # Deterministic ring graph + a few chords, split into 2 graphs of 8 nodes.
    src = jnp.array([i for i in range(N)] + [0, 2, 8, 10], dtype=jnp.int32)
    dst = jnp.array([(i + 1) % 8 + 8 * (i // 8) for i in range(N)]
                    + [4, 6, 12, 14], dtype=jnp.int32)
    edge_index = jnp.stack([src, dst], axis=0)

    # Node -> graph assignment and graph-level labels.
    batch_vec = jnp.concatenate([jnp.zeros(8, jnp.int32), jnp.ones(8, jnp.int32)])
    y = jax.random.randint(k_y, (G,), 0, Dout)

    # GNN-layer parameters (lin_edge is None in this head config).
    scale = (2.0 / (Din + Dout)) ** 0.5
    w = scale * jax.random.normal(k_w, (Din, Dout), dtype=jnp.float32)
    b = 0.01 * jax.random.normal(k_b, (1, Dout), dtype=jnp.float32)

    # Padded geometry (lane-dense last dims, bf16-packed 16-row graph dim).
    T = min(TILE_PREF, _round_up(N, 128))
    Np = _round_up(N, T)
    Gp = _round_up(G, 16)
    Dinp = _round_up(Din, 128)
    Doutp = _round_up(Dout, 128)

    # One-time preprocessing (outside the hot path): operands already padded
    # and bf16, so the kernel wrapper never re-pads / re-casts in HBM.
    ahat_p = build_normalized_adj(edge_index, N, Np)            # [Np, Np] bf16
    pool_p = build_mean_pool(batch_vec, G, Gp, Np)              # [Gp, Np] bf16
    x_p = _pad2(x, Np, Dinp).astype(jnp.bfloat16)               # [Np, Dinp] bf16
    w_p = _pad2(w, Dinp, Doutp).astype(jnp.bfloat16)            # [Dinp,Doutp] bf16
    bias_p = _pad2(b, 1, Doutp).astype(jnp.float32)             # [1, Doutp] f32

    schedule = build_block_schedule(ahat_p, T)

    # Forward: batch.x = layer(batch.x, edge_index); pooled because N != G.
    pred = same_gnn_head(x_p, w_p, bias_p, ahat_p, pool_p, schedule,
                         G, Dout, tile=T)
    label = y
    jax.block_until_ready(pred)

    # Reference (pure JAX f32 on the same bf16-rounded inputs the kernel sees).
    pool_f = pool_p.astype(jnp.float32)[:G, :N]
    ahat_f = ahat_p.astype(jnp.float32)[:N, :N]
    x_f = x_p.astype(jnp.float32)[:N, :Din]
    w_f = w_p.astype(jnp.float32)[:Din, :Dout]
    b_f = bias_p[:, :Dout]
    ref = pool_f @ (ahat_f @ (x_f @ w_f) + b_f)

    assert pred.shape == (G, Dout) and label.shape == (G,)
    assert jnp.allclose(pred, ref, atol=1e-2, rtol=1e-2), (
        float(jnp.max(jnp.abs(pred - ref))))

    print("KERNEL_OK")
</pallas_src>

<mosaic_0001>
module attributes {stable_mosaic.version = 11 : i64} {
  func.func @_fused_head_kernel(%arg0: i32, %arg1: memref<1xi32, #tpu.memory_space<smem>>, %arg2: memref<1xi32, #tpu.memory_space<smem>>, %arg3: memref<1xi32, #tpu.memory_space<smem>>, %arg4: memref<1xi32, #tpu.memory_space<smem>>, %arg5: memref<16x128xbf16, #tpu.memory_space<vmem>>, %arg6: memref<128x128xbf16, #tpu.memory_space<vmem>>, %arg7: memref<128x128xbf16, #tpu.memory_space<vmem>>, %arg8: memref<128x128xbf16, #tpu.memory_space<vmem>>, %arg9: memref<1x128xf32, #tpu.memory_space<vmem>>, %arg10: memref<16x128xf32, #tpu.memory_space<vmem>>, %arg11: memref<16x128xf32, #tpu.memory_space<vmem>>, %arg12: memref<128x128xf32, #tpu.memory_space<vmem>>) attributes {dimension_semantics = [#tpu.dimension_semantics<arbitrary>], iteration_bounds = array<i64: 1>, scalar_prefetch = 4 : i64, scratch_operands = 2 : i64, tpu.core_type = #tpu.core_type<tc>, window_params = [{transform_indices = @transform_0, window_bounds = array<i64: 16, 128>}, {transform_indices = @transform_1, window_bounds = array<i64: 128, 128>}, {transform_indices = @transform_2, window_bounds = array<i64: 128, 128>}, {pipeline_mode = #tpu.pipeline_mode<synchronous>, transform_indices = @transform_3, window_bounds = array<i64: 128, 128>}, {pipeline_mode = #tpu.pipeline_mode<synchronous>, transform_indices = @transform_4, window_bounds = array<i64: 1, 128>}, {pipeline_mode = #tpu.pipeline_mode<synchronous>, transform_indices = @transform_5, window_bounds = array<i64: 16, 128>}]} {
    %c0_i32 = arith.constant 0 : i32
    %0 = arith.cmpi eq, %arg0, %c0_i32 : i32
    %1 = arith.extui %0 : i1 to i32
    %c0_i32_0 = arith.constant 0 : i32
    %2 = arith.cmpi ne, %1, %c0_i32_0 : i32
    scf.if %2 {
      %cst_11 = arith.constant 0.000000e+00 : f32
      %19 = vector.broadcast %cst_11 : f32 to vector<16x128xf32>
      %c0_12 = arith.constant 0 : index
      %c0_13 = arith.constant 0 : index
      %20 = vector.load %arg9[%c0_12, %c0_13] : memref<1x128xf32, #tpu.memory_space<vmem>>, vector<1x128xf32>
      %21 = vector.broadcast %20 : vector<1x128xf32> to vector<16x128xf32>
      %22 = arith.addf %19, %21 : vector<16x128xf32>
      %c0_14 = arith.constant 0 : index
      %c0_15 = arith.constant 0 : index
      %23 = vector.load %arg10[%c0_14, %c0_15] : memref<16x128xf32, #tpu.memory_space<vmem>>, vector<16x128xf32>
      tpu.vector_store %arg10[%c0_14, %c0_15], %22 {strides = array<i32>} : memref<16x128xf32, #tpu.memory_space<vmem>>, vector<16x128xf32>,
    } else {
    }
    %3 = arith.index_cast %arg0 : i32 to index
    %4 = memref.load %arg3[%3] : memref<1xi32, #tpu.memory_space<smem>>
    %c1_i32 = arith.constant 1 : i32
    %5 = arith.cmpi eq, %4, %c1_i32 : i32
    %6 = arith.extui %5 : i1 to i32
    %c0_i32_1 = arith.constant 0 : i32
    %7 = arith.cmpi ne, %6, %c0_i32_1 : i32
    scf.if %7 {
      %cst_11 = arith.constant 0.000000e+00 : f32
      %19 = vector.broadcast %cst_11 : f32 to vector<16x128xf32>
      %c0_12 = arith.constant 0 : index
      %c0_13 = arith.constant 0 : index
      %20 = vector.load %arg11[%c0_12, %c0_13] : memref<16x128xf32, #tpu.memory_space<vmem>>, vector<16x128xf32>
      tpu.vector_store %arg11[%c0_12, %c0_13], %19 {strides = array<i32>} : memref<16x128xf32, #tpu.memory_space<vmem>>, vector<16x128xf32>,
      %c0_14 = arith.constant 0 : index
      %c0_15 = arith.constant 0 : index
      %21 = vector.load %arg7[%c0_14, %c0_15] : memref<128x128xbf16, #tpu.memory_space<vmem>>, vector<128x128xbf16>
      %c0_16 = arith.constant 0 : index
      %c0_17 = arith.constant 0 : index
      %22 = vector.load %arg8[%c0_16, %c0_17] : memref<128x128xbf16, #tpu.memory_space<vmem>>, vector<128x128xbf16>
      %cst_18 = arith.constant dense<0.000000e+00> : vector<128x128xf32>
      %23 = tpu.matmul %21, %22, %cst_18 {dimension_numbers = #tpu.dot_dimension_numbers<[1], [0], [0], [1], [0, 0, 1, 1], [], []>} : vector<128x128xbf16>, vector<128x128xbf16>, vector<128x128xf32> -> vector<128x128xf32>
      %c0_19 = arith.constant 0 : index
      %c0_20 = arith.constant 0 : index
      %24 = vector.load %arg12[%c0_19, %c0_20] : memref<128x128xf32, #tpu.memory_space<vmem>>, vector<128x128xf32>
      tpu.vector_store %arg12[%c0_19, %c0_20], %23 {strides = array<i32>} : memref<128x128xf32, #tpu.memory_space<vmem>>, vector<128x128xf32>,
    } else {
    }
    %c0 = arith.constant 0 : index
    %c0_2 = arith.constant 0 : index
    %8 = vector.load %arg11[%c0, %c0_2] : memref<16x128xf32, #tpu.memory_space<vmem>>, vector<16x128xf32>
    %c0_3 = arith.constant 0 : index
    %c0_4 = arith.constant 0 : index
    %9 = vector.load %arg5[%c0_3, %c0_4] : memref<16x128xbf16, #tpu.memory_space<vmem>>, vector<16x128xbf16>
    %c0_5 = arith.constant 0 : index
    %c0_6 = arith.constant 0 : index
    %10 = vector.load %arg6[%c0_5, %c0_6] : memref<128x128xbf16, #tpu.memory_space<vmem>>, vector<128x128xbf16>
    %cst = arith.constant dense<0.000000e+00> : vector<16x128xf32>
    %11 = tpu.matmul %9, %10, %cst {dimension_numbers = #tpu.dot_dimension_numbers<[1], [0], [0], [1], [0, 0, 1, 1], [], []>} : vector<16x128xbf16>, vector<128x128xbf16>, vector<16x128xf32> -> vector<16x128xf32>
    %12 = arith.addf %8, %11 : vector<16x128xf32>
    %c0_7 = arith.constant 0 : index
    %c0_8 = arith.constant 0 : index
    %13 = vector.load %arg11[%c0_7, %c0_8] : memref<16x128xf32, #tpu.memory_space<vmem>>, vector<16x128xf32>
    tpu.vector_store %arg11[%c0_7, %c0_8], %12 {strides = array<i32>} : memref<16x128xf32, #tpu.memory_space<vmem>>, vector<16x128xf32>,
    %14 = arith.index_cast %arg0 : i32 to index
    %15 = memref.load %arg4[%14] : memref<1xi32, #tpu.memory_space<smem>>
    %c1_i32_9 = arith.constant 1 : i32
    %16 = arith.cmpi eq, %15, %c1_i32_9 : i32
    %17 = arith.extui %16 : i1 to i32
    %c0_i32_10 = arith.constant 0 : i32
    %18 = arith.cmpi ne, %17, %c0_i32_10 : i32
    scf.if %18 {
      %c0_11 = arith.constant 0 : index
      %c0_12 = arith.constant 0 : index
      %19 = vector.load %arg10[%c0_11, %c0_12] : memref<16x128xf32, #tpu.memory_space<vmem>>, vector<16x128xf32>
      %c0_13 = arith.constant 0 : index
      %c0_14 = arith.constant 0 : index
      %20 = vector.load %arg11[%c0_13, %c0_14] : memref<16x128xf32, #tpu.memory_space<vmem>>, vector<16x128xf32>
      %c0_15 = arith.constant 0 : index
      %c0_16 = arith.constant 0 : index
      %21 = vector.load %arg12[%c0_15, %c0_16] : memref<128x128xf32, #tpu.memory_space<vmem>>, vector<128x128xf32>
      %cst_17 = arith.constant dense<0.000000e+00> : vector<16x128xf32>
      %22 = tpu.matmul %20, %21, %cst_17 {dimension_numbers = #tpu.dot_dimension_numbers<[1], [0], [0], [1], [0, 0, 1, 1], [], []>} : vector<16x128xf32>, vector<128x128xf32>, vector<16x128xf32> -> vector<16x128xf32>
      %23 = arith.addf %19, %22 : vector<16x128xf32>
      %c0_18 = arith.constant 0 : index
      %c0_19 = arith.constant 0 : index
      %24 = vector.load %arg10[%c0_18, %c0_19] : memref<16x128xf32, #tpu.memory_space<vmem>>, vector<16x128xf32>
      tpu.vector_store %arg10[%c0_18, %c0_19], %23 {strides = array<i32>} : memref<16x128xf32, #tpu.memory_space<vmem>>, vector<16x128xf32>,
    } else {
    }
    return
  }
  func.func @transform_0(%arg0: i32, %arg1: memref<1xi32, #tpu.memory_space<smem>>, %arg2: memref<1xi32, #tpu.memory_space<smem>>, %arg3: memref<1xi32, #tpu.memory_space<smem>>, %arg4: memref<1xi32, #tpu.memory_space<smem>>) -> (i32, i32) {
    %0 = arith.index_cast %arg0 : i32 to index
    %1 = memref.load %arg1[%0] : memref<1xi32, #tpu.memory_space<smem>>
    %c0_i32 = arith.constant 0 : i32
    %c0_i32_0 = arith.constant 0 : i32
    return %c0_i32, %1 : i32, i32
  }
  func.func @transform_1(%arg0: i32, %arg1: memref<1xi32, #tpu.memory_space<smem>>, %arg2: memref<1xi32, #tpu.memory_space<smem>>, %arg3: memref<1xi32, #tpu.memory_space<smem>>, %arg4: memref<1xi32, #tpu.memory_space<smem>>) -> (i32, i32) {
    %0 = arith.index_cast %arg0 : i32 to index
    %1 = memref.load %arg1[%0] : memref<1xi32, #tpu.memory_space<smem>>
    %2 = arith.index_cast %arg0 : i32 to index
    %3 = memref.load %arg2[%2] : memref<1xi32, #tpu.memory_space<smem>>
    %c0_i32 = arith.constant 0 : i32
    return %1, %3 : i32, i32
  }
  func.func @transform_2(%arg0: i32, %arg1: memref<1xi32, #tpu.memory_space<smem>>, %arg2: memref<1xi32, #tpu.memory_space<smem>>, %arg3: memref<1xi32, #tpu.memory_space<smem>>, %arg4: memref<1xi32, #tpu.memory_space<smem>>) -> (i32, i32) {
    %0 = arith.index_cast %arg0 : i32 to index
    %1 = memref.load %arg2[%0] : memref<1xi32, #tpu.memory_space<smem>>
    %c0_i32 = arith.constant 0 : i32
    %c0_i32_0 = arith.constant 0 : i32
    return %1, %c0_i32 : i32, i32
  }
  func.func @transform_3(%arg0: i32, %arg1: memref<1xi32, #tpu.memory_space<smem>>, %arg2: memref<1xi32, #tpu.memory_space<smem>>, %arg3: memref<1xi32, #tpu.memory_space<smem>>, %arg4: memref<1xi32, #tpu.memory_space<smem>>) -> (i32, i32) {
    %c0_i32 = arith.constant 0 : i32
    %c0_i32_0 = arith.constant 0 : i32
    %c0_i32_1 = arith.constant 0 : i32
    return %c0_i32, %c0_i32_0 : i32, i32
  }
  func.func @transform_4(%arg0: i32, %arg1: memref<1xi32, #tpu.memory_space<smem>>, %arg2: memref<1xi32, #tpu.memory_space<smem>>, %arg3: memref<1xi32, #tpu.memory_space<smem>>, %arg4: memref<1xi32, #tpu.memory_space<smem>>) -> (i32, i32) {
    %c0_i32 = arith.constant 0 : i32
    %c0_i32_0 = arith.constant 0 : i32
    %c0_i32_1 = arith.constant 0 : i32
    return %c0_i32, %c0_i32_0 : i32, i32
  }
  func.func @transform_5(%arg0: i32, %arg1: memref<1xi32, #tpu.memory_space<smem>>, %arg2: memref<1xi32, #tpu.memory_space<smem>>, %arg3: memref<1xi32, #tpu.memory_space<smem>>, %arg4: memref<1xi32, #tpu.memory_space<smem>>) -> (i32, i32) {
    %c0_i32 = arith.constant 0 : i32
    %c0_i32_0 = arith.constant 0 : i32
    %c0_i32_1 = arith.constant 0 : i32
    return %c0_i32, %c0_i32_0 : i32, i32
  }
}

</mosaic_0001>

<bundles_post_ra>
// kernel: tpu_custom_call.1
= control target key start
LH: loop header
LB: loop body
LE: loop exit
PB: predicated region body
PF: predicated region fallthrough
CT: control target
= control target key end

     0   :  { %s1106_s0 = inlined_call_operand.<no memory space> [shape: s32[1], index: 0, kind: input, shape index: {}]   ;;  %s1107_s1 = inlined_call_operand.<no memory space> [shape: s32[1], index: 1, kind: input, shape index: {}]   ;;  %s1108_s2 = inlined_call_operand.<no memory space> [shape: s32[1], index: 2, kind: input, shape index: {}]   ;;  %s1109_s3 = inlined_call_operand.<no memory space> [shape: s32[1], index: 3, kind: input, shape index: {}]   ;;  %s1110_s4 = inlined_call_operand.vmem [shape: bf16[16,128], index: 4, kind: input, shape index: {}]   ;;  %s1111_s5 = inlined_call_operand.hbm [shape: bf16[128,128], index: 5, kind: input, shape index: {}]   ;;  %s1112_s6 = inlined_call_operand.hbm [shape: bf16[128,128], index: 6, kind: input, shape index: {}]   ;;  %s1113_s7 = inlined_call_operand.hbm [shape: bf16[128,128], index: 7, kind: input, shape index: {}]   ;;  %s1114_s8 = inlined_call_operand.vmem [shape: f32[1,128], index: 8, kind: input, shape index: {}]   ;;  %s1115_s9 = inlined_call_operand.hbm [shape: f32[16,128], index: 9, kind: output, shape index: {}]  }
   0x1   :  { %17 = sst [smem:[#allocation8]] %s1109_s3 }
   0x2   :  { %18 = vsyncpa [#allocation10], 0 }
   0x3   :  { %19 = vsyncpa [#allocation13], 0 }
   0x4   :  { %20 = vsyncpa [#allocation11], 0  ;;  %s651_s13 = sshll.u32 %s1107_s1, 10  ;;  %s964_s17 = smov [#allocation12]  }
   0x5   :  { %s55_s16 = scalar_lea.hbm %s1112_s6, %s651_s13  ;;  %s56_s18 = sshll.u32 %s964_s17, 4  ;;  %s57_s18 = int_to_ptr.vmem [resolvable:$true] %s56_s18 }
   0x6   :  { %s618_s21 = sshll.u32 %s1106_s0, 4  ;;  %s866_s22 = scalar_lea.hbm %s55_s16, 1024 }
   0x7   :  { %p867_p0 = scmp.ne.s32.totalorder %s55_s16, %s866_s22  ;;  %s868_s24 = scalar_lea.hbm %s1112_s6, 1024 }
   0x8   :  { %p869_p1 = scmp.lt.u32.totalorder %s55_s16, %s1112_s6  ;;  %p870_p2 = scmp.lt.u32.totalorder %s868_s24, %s866_s22 }
   0x9   :  { %p872_p4 = scmp.lt.u32.totalorder %s866_s22, %s55_s16 }
   0xa   :  { %p871_p3 = por %p870_p2, %p869_p1 }
   0xc   :  { %p873_p5 = por %p872_p4, %p871_p3 }
   0xe   :  { %p874_p6 = pnand %p873_p5, %p867_p0 }
  0x10   :  { %877 = shalt.err (!%p874_p6)
}
  0x11   :  { %s878_s27 = scalar_lea.vmem %s57_s18, 1024  ;;  %p883_p8 = scmp.lt.s32.totalorder %s57_s18, %s57_s18 }
  0x12   :  { %p879_p7 = scmp.ne.s32.totalorder %s57_s18, %s878_s27  ;;  %p884_p9 = scmp.lt.s32.totalorder %s878_s27, %s878_s27 }
  0x14   :  { %p885_p10 = por %p884_p9, %p883_p8 }
  0x16   :  { %p886_p11 = pnand %p885_p10, %p879_p7 }
  0x18   :  { %889 = shalt.err (!%p886_p11)
}
  0x19   :  { %s965_s28 = smov 64   ;;  %s966_s29 = smov 4  }
  0x1a   :  { %62 = dma.hbm_to_vmem [thread:$0]  %s55_s16, 1024, %s57_s18, [#allocation13], %s965_s28, %s965_s28, %s966_s29  }
  0x1b   :  { %s37_s10 = sadd.s32 %s618_s21, %s1107_s1  ;;  %s967_s12 = smov [#allocation9]  }
  0x1c   :  { %s619_s11 = sshll.u32 %s37_s10, 6  ;;  %s40_s13 = sshll.u32 %s967_s12, 4  ;;  %s41_s13 = int_to_ptr.vmem [resolvable:$true] %s40_s13 }
  0x1d   :  { %s39_s17 = scalar_lea.hbm %s1111_s5, %s619_s11  ;;  %s892_s3 = scalar_lea.hbm %s1111_s5, 1024 }
  0x1e   :  { %s890_s19 = scalar_lea.hbm %s39_s17, 1024  ;;  %p893_p13 = scmp.lt.u32.totalorder %s39_s17, %s1111_s5 }
  0x1f   :  { %p891_p12 = scmp.ne.s32.totalorder %s39_s17, %s890_s19  ;;  %p894_p0 = scmp.lt.u32.totalorder %s892_s3, %s890_s19 }
  0x20   :  { %p896_p2 = scmp.lt.u32.totalorder %s890_s19, %s39_s17 }
  0x21   :  { %p895_p1 = por %p894_p0, %p893_p13 }
  0x23   :  { %p897_p3 = por %p896_p2, %p895_p1 }
  0x25   :  { %p898_p4 = pnand %p897_p3, %p891_p12 }
  0x27   :  { %901 = shalt.err (!%p898_p4)
}
  0x28   :  { %s902_s1 = scalar_lea.vmem %s41_s13, 1024  ;;  %p907_p6 = scmp.lt.s32.totalorder %s41_s13, %s41_s13 }
  0x29   :  { %p903_p5 = scmp.ne.s32.totalorder %s41_s13, %s902_s1  ;;  %p908_p7 = scmp.lt.s32.totalorder %s902_s1, %s902_s1 }
  0x2b   :  { %p909_p8 = por %p908_p7, %p907_p6 }
  0x2d   :  { %p910_p9 = pnand %p909_p8, %p903_p5 }
  0x2f   :  { %913 = shalt.err (!%p910_p9)
}
  0x30   :  { %46 = dma.hbm_to_vmem [thread:$0]  %s39_s17, 1024, %s41_s13, [#allocation10], %s965_s28, %s965_s28, %s966_s29  }
  0x31   :  { %s968_s18 = smov [#allocation14]   ;;  %s914_s25 = scalar_lea.hbm %s1113_s7, 1024 }
  0x32   :  { %s68_s21 = sshll.u32 %s968_s18, 4  ;;  %p915_p10 = scmp.ne.s32.totalorder %s1113_s7, %s914_s25  ;;  %s69_s21 = int_to_ptr.vmem [resolvable:$true] %s68_s21 }
  0x33   :  { %p918_p11 = scmp.lt.u32.totalorder %s914_s25, %s1113_s7 }
  0x35   :  { %p920_p12 = pnand %p918_p11, %p915_p10 }
  0x37   :  { %923 = shalt.err (!%p920_p12)
}
  0x38   :  { %s924_s10 = scalar_lea.vmem %s69_s21, 1024  ;;  %p929_p0 = scmp.lt.s32.totalorder %s69_s21, %s69_s21 }
  0x39   :  { %p925_p13 = scmp.ne.s32.totalorder %s69_s21, %s924_s10  ;;  %p930_p1 = scmp.lt.s32.totalorder %s924_s10, %s924_s10 }
  0x3b   :  { %p931_p2 = por %p930_p1, %p929_p0 }
  0x3d   :  { %p932_p3 = pnand %p931_p2, %p925_p13 }
  0x3f   :  { %935 = shalt.err (!%p932_p3)
}
  0x40   :  { %74 = dma.hbm_to_vmem [thread:$0]  %s1113_s7, 1024, %s69_s21, [#allocation13], %s965_s28, %s965_s28, %s966_s29  }
  0x41   :  { %958 = dma.done.wait [#allocation10], 1024  }
  0x42   :  { %959 = vsyncadd [#allocation10], 4294966272 }
  0x43   :  { %960 = dma.done.wait [#allocation13], 2048  }
  0x44   :  { %961 = vsyncadd [#allocation13], 4294965248  ;;  %p92_p4 = scmp.lt.s32.totalorder %s1106_s0, 0  ;;  %v623_v0 = vld [vmem:[%s1114_s8] ss:$0 sm:$0xff]  ;;  %p624_p5 = scmp.ne.s32.totalorder %s1108_s2, 1 }
  0x45   :  { %115 = vst [vmem:[#allocation15] sm:$0xff] %v623_v0  ;;  %116 = vst [vmem:[#allocation15 + $0x8] sm:$0xff] %v623_v0  ;;  %v841_v1 = vld [vmem:[#allocation14] sm:$0xff] (!%p624_p5)   ;;  %v969_v2 = vmov (!%p624_p5), 0.0   ;;  %v842_v3 = vld [vmem:[#allocation14 + $0x8] sm:$0xff] (!%p624_p5)  }
  0x46   :  { %s1117_s0 = smov (!%p92_p4, %s1106_s0), 0  ;;  %121 = sbr.rel (%p624_p5) target bundleno = 327 (0x147), region = 41 }
  0x47   :  { %s622_s19 = sshll.u32 %s1117_s0, 2  ;;  %122 = vst [vmem:[#allocation2] sm:$0xff] (!%p624_p5), %v969_v2  ;;  %123 = vst [vmem:[#allocation2 + $0x8] sm:$0xff] (!%p624_p5), %v969_v2  ;;  %695 = vmatprep.subr.bf16.mxu0 (!%p624_p5), %v841_v1  ;;  %814 = vmatprep.subr.bf16.mxu1 (!%p624_p5), %v841_v1  ;;  %v843_v4 = vld [vmem:[#allocation14 + $0x10] sm:$0xff] (!%p624_p5)   ;;  %v844_v5 = vld [vmem:[#allocation14 + $0x18] sm:$0xff] (!%p624_p5)  }
  0x48   :  { %s1085_s3 = scalar_lea.vmem %s1110_s4, %s622_s19  ;;  %696 = vmatpush3.bf16.msra.mxu0 (!%p624_p5), %v841_v1  ;;  %822 = vmatpush3.bf16.msra.mxu1 (!%p624_p5), %v841_v1  ;;  %v849_v6 = vld [vmem:[#allocation12] sm:$0xff] (!%p624_p5)   ;;  %v846_v9 = vld [vmem:[#allocation14 + $0x28] sm:$0xff] (!%p624_p5)   ;;  %v847_v10 = vld [vmem:[#allocation14 + $0x30] sm:$0xff] (!%p624_p5)  }
  0x49   :  { %697 = vmatprep.subr.bf16.mxu0 (!%p624_p5), %v842_v3  ;;  %815 = vmatprep.subr.bf16.mxu1 (!%p624_p5), %v842_v3  ;;  %v850_v7 = vld [vmem:[#allocation12 + $0x20] sm:$0xff] (!%p624_p5)   ;;  %v848_v11 = vld [vmem:[#allocation14 + $0x38] sm:$0xff] (!%p624_p5)   ;;  %v851_v12 = vld [vmem:[#allocation12 + $0x8] sm:$0xff] (!%p624_p5)  }
  0x4a   :  { %711 = vmatprep.mubr.bf16.mxu0 (!%p624_p5), %v849_v6  ;;  %v845_v8 = vld [vmem:[#allocation14 + $0x20] sm:$0xff] (!%p624_p5)   ;;  %719 = vmatprep.mubr.bf16.mxu1 (!%p624_p5), %v850_v7  ;;  %v852_v13 = vld [vmem:[#allocation12 + $0x28] sm:$0xff] (!%p624_p5)   ;;  %v853_v14 = vld [vmem:[#allocation12 + $0x10] sm:$0xff] (!%p624_p5)  }
  0x4b   :  { %v854_v15 = vld [vmem:[#allocation12 + $0x30] sm:$0xff] (!%p624_p5)   ;;  %v855_v16 = vld [vmem:[#allocation12 + $0x18] sm:$0xff] (!%p624_p5)  }
  0x4c   :  { %698 = vmatpush3.bf16.msra.mxu0 (!%p624_p5), %v842_v3  ;;  %823 = vmatpush3.bf16.msra.mxu1 (!%p624_p5), %v842_v3  ;;  %v856_v17 = vld [vmem:[#allocation12 + $0x38] sm:$0xff] (!%p624_p5)  }
  0x4d   :  { %699 = vmatprep.subr.bf16.mxu0 %v843_v4  ;;  %816 = vmatprep.subr.bf16.mxu1 %v843_v4 }
  0x50   :  { %700 = vmatpush3.bf16.msra.mxu0 %v843_v4  ;;  %824 = vmatpush3.bf16.msra.mxu1 %v843_v4 }
  0x51   :  { %701 = vmatprep.subr.bf16.mxu0 %v844_v5  ;;  %817 = vmatprep.subr.bf16.mxu1 %v844_v5 }
  0x54   :  { %702 = vmatpush3.bf16.msra.mxu0 %v844_v5  ;;  %825 = vmatpush3.bf16.msra.mxu1 %v844_v5 }
  0x55   :  { %703 = vmatprep.subr.bf16.mxu0 %v845_v8  ;;  %818 = vmatprep.subr.bf16.mxu1 %v845_v8 }
  0x58   :  { %704 = vmatpush3.bf16.msra.mxu0 %v845_v8  ;;  %826 = vmatpush3.bf16.msra.mxu1 %v845_v8 }
  0x59   :  { %705 = vmatprep.subr.bf16.mxu0 %v846_v9  ;;  %819 = vmatprep.subr.bf16.mxu1 %v846_v9 }
  0x5c   :  { %706 = vmatpush3.bf16.msra.mxu0 %v846_v9  ;;  %827 = vmatpush3.bf16.msra.mxu1 %v846_v9 }
  0x5d   :  { %707 = vmatprep.subr.bf16.mxu0 %v847_v10  ;;  %820 = vmatprep.subr.bf16.mxu1 %v847_v10 }
  0x60   :  { %708 = vmatpush3.bf16.msra.mxu0 %v847_v10  ;;  %828 = vmatpush3.bf16.msra.mxu1 %v847_v10 }
  0x61   :  { %709 = vmatprep.subr.bf16.mxu0 %v848_v11  ;;  %821 = vmatprep.subr.bf16.mxu1 %v848_v11 }
  0x64   :  { %710 = vmatpush3.bf16.msra.mxu0 %v848_v11  ;;  %829 = vmatpush3.bf16.msra.mxu1 %v848_v11 }
  0x67   :  { %712 = vmatmul.mubr.bf16.vlgmr.msra.gmra.mrb[0].mxu0 %v851_v12  ;;  %720 = vmatmul.mubr.bf16.vlgmr.msra.gmra.mrb[0].mxu1 %v852_v13 }
  0x68   :  { %715 = vmatprep.mubr.bf16.mxu0 %v853_v14  ;;  %723 = vmatprep.mubr.bf16.mxu1 %v854_v15 }
  0x6f   :  { %716 = vmatmul.mubr.bf16.gmra.mrb[4].mxu0 %v855_v16  ;;  %724 = vmatmul.mubr.bf16.gmra.mrb[4].mxu1 %v856_v17 }
 0x13a   :  { %v713_v18 = vpop.f32.mrb[0].mxu0  ;;  %v721_v19 = vpop.f32.mrb[0].mxu1 }
 0x13b   :  { %351 = vst [vmem:[#allocation3 + $0x10] sm:$0xff] %v713_v18  ;;  %359 = vst [vmem:[#allocation3 + $0x50] sm:$0xff] %v721_v19  ;;  %v286_v20 = vpop.f32.mrb[1].mxu0  ;;  %v318_v21 = vpop.f32.mrb[1].mxu1 }
 0x13c   :  { %349 = vst [vmem:[#allocation3] sm:$0xff] %v286_v20  ;;  %357 = vst [vmem:[#allocation3 + $0x40] sm:$0xff] %v318_v21  ;;  %v714_v22 = vpop.f32.mrb[2].mxu0  ;;  %v722_v23 = vpop.f32.mrb[2].mxu1 }
 0x13d   :  { %352 = vst [vmem:[#allocation3 + $0x18] sm:$0xff] %v714_v22  ;;  %360 = vst [vmem:[#allocation3 + $0x58] sm:$0xff] %v722_v23  ;;  %v289_v24 = vpop.f32.mrb[3].mxu0  ;;  %v321_v25 = vpop.f32.mrb[3].mxu1 }
 0x13e   :  { %350 = vst [vmem:[#allocation3 + $0x8] sm:$0xff] %v289_v24  ;;  %358 = vst [vmem:[#allocation3 + $0x48] sm:$0xff] %v321_v25 }
 0x142   :  { %v717_v26 = vpop.f32.mrb[4].mxu0  ;;  %v725_v27 = vpop.f32.mrb[4].mxu1 }
 0x143   :  { %355 = vst [vmem:[#allocation3 + $0x30] sm:$0xff] %v717_v26  ;;  %363 = vst [vmem:[#allocation3 + $0x70] sm:$0xff] %v725_v27  ;;  %v302_v28 = vpop.f32.mrb[5].mxu0  ;;  %v334_v29 = vpop.f32.mrb[5].mxu1 }
 0x144   :  { %353 = vst [vmem:[#allocation3 + $0x20] sm:$0xff] %v302_v28  ;;  %361 = vst [vmem:[#allocation3 + $0x60] sm:$0xff] %v334_v29  ;;  %v718_v30 = vpop.f32.mrb[6].mxu0  ;;  %v726_v31 = vpop.f32.mrb[6].mxu1 }
 0x145   :  { %356 = vst [vmem:[#allocation3 + $0x38] sm:$0xff] %v718_v30  ;;  %364 = vst [vmem:[#allocation3 + $0x78] sm:$0xff] %v726_v31  ;;  %v305_v32 = vpop.f32.mrb[7].mxu0  ;;  %v337_v33 = vpop.f32.mrb[7].mxu1 }
 0x146   :  { %354 = vst [vmem:[#allocation3 + $0x28] sm:$0xff] %v305_v32  ;;  %362 = vst [vmem:[#allocation3 + $0x68] sm:$0xff] %v337_v33 }
 0x147 PF:  { %v857_v34 = vld [vmem:[#allocation9] sm:$0xff]   ;;  %v970_v35 = vmov 0.0   ;;  %v858_v36 = vld [vmem:[#allocation9 + $0x8] sm:$0xff]   ;;  %vm971_vm0 = vmmov 0   ;;  %v859_v37 = vld [vmem:[#allocation9 + $0x10] sm:$0xff]   ;;  %s484_s0 = sld [smem:[#allocation8]] }
 0x148   :  { %727 = vmatprep.subr.bf16.mxu0 %v970_v35  ;;  %743 = vmatprep.mubr.msk.bf16.mxu0 %vm971_vm0, %v970_v35  ;;  %v860_v38 = vld [vmem:[#allocation9 + $0x18] sm:$0xff]   ;;  %v861_v39 = vld [vmem:[#allocation9 + $0x20] sm:$0xff]   ;;  %v862_v40 = vld [vmem:[#allocation9 + $0x28] sm:$0xff]  }
 0x149   :  { %728 = vmatpush3.bf16.msra.mxu0 %v857_v34  ;;  %v863_v41 = vld [vmem:[#allocation9 + $0x30] sm:$0xff]   ;;  %v864_v42 = vld [vmem:[#allocation9 + $0x38] sm:$0xff]  }
 0x14a   :  { %729 = vmatprep.subr.bf16.mxu0 %v970_v35  ;;  %v865_v43 = vld [vmem:[%s1085_s3] sm:$0xff]   ;;  %v366_v46 = vld [vmem:[#allocation2 + $0x8] sm:$0xff] }
 0x14b   :  { %v365_v44 = vld [vmem:[#allocation2] sm:$0xff] }
 0x14d   :  { %730 = vmatpush3.bf16.msra.mxu0 %v858_v36  ;;  %p650_p6 = scmp.ne.s32.totalorder %s484_s0, 1 }
 0x14e   :  { %731 = vmatprep.subr.bf16.mxu0 %v970_v35  ;;  %v493_v52 = vld [vmem:[#allocation3] sm:$0xff] (!%p650_p6)  ;;  %v494_v53 = vld [vmem:[#allocation3 + $0x8] sm:$0xff] (!%p650_p6)  ;;  %v495_v54 = vld [vmem:[#allocation3 + $0x10] sm:$0xff] (!%p650_p6) }
 0x14f   :  { %v782_v55 = vpack.c.bf16 (!%p650_p6), %v494_v53, %v493_v52  ;;  %v496_v56 = vld [vmem:[#allocation3 + $0x18] sm:$0xff] (!%p650_p6)  ;;  %v497_v58 = vld [vmem:[#allocation3 + $0x20] sm:$0xff] (!%p650_p6)  ;;  %v498_v59 = vld [vmem:[#allocation3 + $0x28] sm:$0xff] (!%p650_p6) }
 0x150   :  { %v786_v57 = vpack.c.bf16 (!%p650_p6), %v496_v56, %v495_v54  ;;  %v790_v60 = vpack.c.bf16 (!%p650_p6), %v498_v59, %v497_v58  ;;  %v499_v62 = vld [vmem:[#allocation3 + $0x30] sm:$0xff] (!%p650_p6)  ;;  %v500_v63 = vld [vmem:[#allocation3 + $0x38] sm:$0xff] (!%p650_p6)  ;;  %v501_v1 = vld [vmem:[#allocation3 + $0x40] sm:$0xff] (!%p650_p6) }
 0x151   :  { %732 = vmatpush3.bf16.msra.mxu0 %v859_v37  ;;  %v794_v0 = vpack.c.bf16 (!%p650_p6), %v500_v63, %v499_v62  ;;  %v502_v2 = vld [vmem:[#allocation3 + $0x48] sm:$0xff] (!%p650_p6)  ;;  %v503_v4 = vld [vmem:[#allocation3 + $0x50] sm:$0xff] (!%p650_p6)  ;;  %v504_v5 = vld [vmem:[#allocation3 + $0x58] sm:$0xff] (!%p650_p6) }
 0x152   :  { %733 = vmatprep.subr.bf16.mxu0 %v970_v35  ;;  %v798_v3 = vpack.c.bf16 (!%p650_p6), %v502_v2, %v501_v1  ;;  %v802_v6 = vpack.c.bf16 (!%p650_p6), %v504_v5, %v503_v4  ;;  %v505_v7 = vld [vmem:[#allocation3 + $0x60] sm:$0xff] (!%p650_p6)  ;;  %v506_v8 = vld [vmem:[#allocation3 + $0x68] sm:$0xff] (!%p650_p6)  ;;  %v507_v10 = vld [vmem:[#allocation3 + $0x70] sm:$0xff] (!%p650_p6) }
 0x153   :  { %v806_v9 = vpack.c.bf16 (!%p650_p6), %v506_v8, %v505_v7  ;;  %v508_v11 = vld [vmem:[#allocation3 + $0x78] sm:$0xff] (!%p650_p6)  ;;  %v490_v14 = vld [vmem:[#allocation15 + $0x8] sm:$0xff] (!%p650_p6)  ;;  %v489_v15 = vld [vmem:[#allocation15] sm:$0xff] (!%p650_p6) }
 0x154   :  { %v810_v12 = vpack.c.bf16 (!%p650_p6), %v508_v11, %v507_v10 }
 0x155   :  { %734 = vmatpush3.bf16.msra.mxu0 %v860_v38 }
 0x156   :  { %735 = vmatprep.subr.bf16.mxu0 %v970_v35 }
 0x159   :  { %736 = vmatpush3.bf16.msra.mxu0 %v861_v39 }
 0x15a   :  { %737 = vmatprep.subr.bf16.mxu0 %v970_v35 }
 0x15d   :  { %738 = vmatpush3.bf16.msra.mxu0 %v862_v40 }
 0x15e   :  { %739 = vmatprep.subr.bf16.mxu0 %v970_v35 }
 0x161   :  { %740 = vmatpush3.bf16.msra.mxu0 %v863_v41 }
 0x162   :  { %741 = vmatprep.subr.bf16.mxu0 %v970_v35 }
 0x165   :  { %742 = vmatpush3.bf16.msra.mxu0 %v864_v42 }
 0x166   :  { %783 = vmatprep.subr.bf16.mxu0 (!%p650_p6), %v782_v55 }
 0x168   :  { %744 = vmatmul.mubr.bf16.vlgmr.msra.gmra.mrb[0].mxu0 %v865_v43 }
 0x169   :  { %785 = vmatpush3.bf16.msra.mxu0 (!%p650_p6), %v782_v55 }
 0x16a   :  { %787 = vmatprep.subr.bf16.mxu0 (!%p650_p6), %v786_v57 }
 0x16d   :  { %789 = vmatpush3.bf16.msra.mxu0 (!%p650_p6), %v786_v57 }
 0x16e   :  { %791 = vmatprep.subr.bf16.mxu0 (!%p650_p6), %v790_v60 }
 0x171   :  { %793 = vmatpush3.bf16.msra.mxu0 (!%p650_p6), %v790_v60 }
 0x172   :  { %795 = vmatprep.subr.bf16.mxu0 (!%p650_p6), %v794_v0 }
 0x175   :  { %797 = vmatpush3.bf16.msra.mxu0 (!%p650_p6), %v794_v0 }
 0x176   :  { %799 = vmatprep.subr.bf16.mxu0 (!%p650_p6), %v798_v3 }
 0x179   :  { %801 = vmatpush3.bf16.msra.mxu0 (!%p650_p6), %v798_v3 }
 0x17a   :  { %803 = vmatprep.subr.bf16.mxu0 (!%p650_p6), %v802_v6 }
 0x17d   :  { %805 = vmatpush3.bf16.msra.mxu0 (!%p650_p6), %v802_v6 }
 0x17e   :  { %807 = vmatprep.subr.bf16.mxu0 (!%p650_p6), %v806_v9 }
 0x181   :  { %809 = vmatpush3.bf16.msra.mxu0 (!%p650_p6), %v806_v9 }
 0x182   :  { %811 = vmatprep.subr.bf16.mxu0 (!%p650_p6), %v810_v12 }
 0x185   :  { %813 = vmatpush3.bf16.msra.mxu0 (!%p650_p6), %v810_v12 }
 0x23a   :  { %488 = sbr.rel (%p650_p6) target bundleno = 800 (0x320), region = 45 }
 0x23b   :  { %v473_v45 = vpop.f32.mrb[0].mxu0 }
 0x23c   :  { %v480_v47 = vadd.f32 %v473_v45, %v365_v44  ;;  %v745_v48 = vpop.f32.mrb[1].mxu0 }
 0x23d   :  { %v476_v49 = vpop.f32.mrb[2].mxu0 }
 0x23e   :  { %482 = vst [vmem:[#allocation2] sm:$0xff] %v480_v47  ;;  %v481_v50 = vadd.f32 %v476_v49, %v366_v46  ;;  %v746_v51 = vpop.f32.mrb[3].mxu0 }
 0x240   :  { %483 = vst [vmem:[#allocation2 + $0x8] sm:$0xff] %v481_v50 }
 0x245   :  { %v491_v61 = vld [vmem:[#allocation2] sm:$0xff] }
 0x246   :  { %779 = vmatprep.mubr.f32.mxu0 %v491_v61 }
 0x247   :  { %v492_v13 = vld [vmem:[#allocation2 + $0x8] sm:$0xff] }
 0x248   :  { %780 = vmatmul.mubr.f32.vlgmr.msra.gmra.mrb[0].mxu0 %v492_v13 }
 0x31b   :  { %v781_v16 = vpop.f32.mrb[0].mxu0 }
 0x31c   :  { %v585_v17 = vadd.f32 %v781_v16, %v490_v14  ;;  %v575_v18 = vpop.f32.mrb[1].mxu0 }
 0x31d   :  { %v584_v19 = vadd.f32 %v575_v18, %v489_v15 }
 0x31e   :  { %587 = vst [vmem:[#allocation15 + $0x8] sm:$0xff] %v585_v17 }
 0x31f   :  { %586 = vst [vmem:[#allocation15] sm:$0xff] %v584_v19 }
 0x320 PF:  { %s972_s2 = smov [#allocation15]  }
 0x321   :  { %s593_s4 = sshll.u32 %s972_s2, 4  ;;  %s594_s4 = int_to_ptr.vmem [resolvable:$true] %s593_s4 }
 0x322   :  { %s936_s8 = scalar_lea.vmem %s594_s4, 256  ;;  %p941_p8 = scmp.lt.s32.totalorder %s594_s4, %s594_s4 }
 0x323   :  { %p937_p7 = scmp.ne.s32.totalorder %s594_s4, %s936_s8  ;;  %p942_p9 = scmp.lt.s32.totalorder %s936_s8, %s936_s8 }
 0x325   :  { %p943_p10 = por %p942_p9, %p941_p8 }
 0x327   :  { %p944_p11 = pnand %p943_p10, %p937_p7 }
 0x329   :  { %947 = shalt.err (!%p944_p11)
}
 0x32a   :  { %s948_s18 = scalar_lea.hbm %s1115_s9, 256 }
 0x32b   :  { %p949_p12 = scmp.ne.s32.totalorder %s1115_s9, %s948_s18  ;;  %p952_p13 = scmp.lt.u32.totalorder %s948_s18, %s1115_s9 }
 0x32d   :  { %p954_p0 = pnand %p952_p13, %p949_p12 }
 0x32f   :  { %957 = shalt.err (!%p954_p0)
}
 0x330   :  { %s973_s26 = smov 128   ;;  %s974_s27 = smov 8  }
 0x331   :  { %599 = dma.vmem_to_hbm [thread:$0]  %s594_s4, 256, %s1115_s9, [#allocation11], %s973_s26, %s973_s26, %s974_s27  }
 0x332   :  { %962 = dma.done.wait [#allocation11], 256  }
 0x333   :  { %963 = vsyncadd [#allocation11], 4294967040 }
 0x334   :  { %603 = vsyncpa [#allocation10], 1 }
 0x335   :  { %604 = vsyncpa [#allocation13], 1 }
 0x336   :  { %605 = vsyncpa [#allocation11], 1 }

</bundles_post_ra>
